<compile_context>
chip_gen: v5e
topology: v5e:2x2
jax: 0.10.0
libtpu: 0.0.40
codegen_flags: <defaults>
</compile_context>

<pallas_src>
import math
from functools import partial

import numpy as np
import jax
import jax.numpy as jnp
from jax.experimental import pallas as pl
from jax.experimental.pallas import tpu as pltpu


def _attention_kernel(params_ref, q_ref, k_ref, v_ref, kpm_ref, *out_refs,
                      tb, tq, need_weights):
    """RAM_SAL scaled-dot-product attention; tb batches x tq query rows per step.

    params_ref (SMEM, scalar-prefetched): (B, 6) int32 rows of
      (row_a, lo_a, hi_a, row_b, lo_b, hi_b) — the two query rows whose key
      ranges [lo, hi] (inclusive) plus key 0 get masked out.
    """
    if need_weights:
        out_ref, attn_ref = out_refs
    else:
        (out_ref,) = out_refs

    bi = pl.program_id(0)          # batch-block index
    qi = pl.program_id(1)          # query-tile index
    q_start = qi * tq

    Lk = k_ref.shape[1]
    D = q_ref.shape[2]
    scale = 1.0 / math.sqrt(D)

    # Small iota temporaries, hoisted out of the per-batch loop. The (tq, Lk)
    # comparisons only materialize inside the single mask expression below.
    qrow = jax.lax.broadcasted_iota(jnp.int32, (tq, 1), 0) + q_start
    kidx = jax.lax.broadcasted_iota(jnp.int32, (1, Lk), 1)

    for bb in range(tb):                          # static unroll over block batches
        b = bi * tb + bb                          # global batch index (SMEM params)

        q = q_ref[bb]                             # (tq, D)  native dtype
        k = k_ref[bb]                             # (Lk, D)
        v = v_ref[bb]                             # (Lk, Dv)

        # Fold the 1/sqrt(D) scale into Q.
        qs = q * jnp.asarray(scale, dtype=q.dtype)

        # scores = (Q/sqrt(d)) @ K^T — native-dtype operands, f32 accumulation.
        scores = jax.lax.dot_general(
            qs, k, (((1,), (1,)), ((), ())),
            preferred_element_type=jnp.float32)   # (tq, Lk) f32

        row_a = params_ref[b, 0]
        lo_a = params_ref[b, 1]
        hi_a = params_ref[b, 2]
        row_b = params_ref[b, 3]
        lo_b = params_ref[b, 4]
        hi_b = params_ref[b, 5]

        in_a = (qrow == row_a) & (((kidx >= lo_a) & (kidx <= hi_a)) | (kidx == 0))
        in_b = (qrow == row_b) & (((kidx >= lo_b) & (kidx <= hi_b)) | (kidx == 0))
        mask = (kpm_ref[bb] != 0) | in_a | in_b   # (tq, Lk) via broadcast

        # Single select; -inf preserves torch's `scores[mask] -= inf` semantics.
        scores = jnp.where(mask, -jnp.inf, scores)

        # Softmax over the key axis.
        m = jnp.max(scores, axis=-1, keepdims=True)
        p = jnp.exp(scores - m)
        s = jnp.sum(p, axis=-1, keepdims=True)
        inv = 1.0 / s

        if need_weights:
            attn = p * inv
            attn_ref[bb] = attn.astype(attn_ref.dtype)
            out = jnp.dot(attn.astype(v.dtype), v,
                          preferred_element_type=jnp.float32)
        else:
            # Defer normalization to the (tq, Dv) output instead of (tq, Lk) probs.
            out = jnp.dot(p.astype(v.dtype), v,
                          preferred_element_type=jnp.float32) * inv
        out_ref[bb] = out.astype(out_ref.dtype)


def _choose_tq(lq, cap=512):
    """Query-tile size: full rows when small, else a multiple-of-8 divisor."""
    if lq <= cap:
        return lq
    for t in range(cap, 7, -8):
        if lq % t == 0:
            return t
    return lq


def _choose_tb(b, lk, tq, d, dv, itemsize, need_weights,
               budget=24 * 1024 * 1024):
    """Batches per grid step: as many as fit a conservative VMEM budget."""
    for tb in (16, 8, 4, 2, 1):
        if b % tb:
            continue
        per_step = tb * (tq * d + lk * d + lk * dv + lk) * itemsize
        per_step += tb * tq * dv * itemsize
        if need_weights:
            per_step += tb * tq * lk * 4
        if 2 * per_step <= budget or tb == 1:   # x2 for double buffering
            return tb
    return 1


@partial(jax.jit, static_argnames=("need_weights",))
def my_dot_product_attention(queries, keys, values, key_padding_mask,
                             cls_sep_idxs, need_weights=False):
    """JAX/Pallas equivalent of myDotProductAttention.forward."""
    B, Lq, D = queries.shape
    Lk = keys.shape[1]
    Dv = values.shape[2]

    c = cls_sep_idxs.astype(jnp.int32)
    if c.shape[1] == 3:
        row_a, lo_a, hi_a = c[:, 1], c[:, 1] + 1, c[:, 2]
        row_b, lo_b, hi_b = c[:, 2], c[:, 0] + 1, c[:, 1]
    else:
        row_a, lo_a, hi_a = c[:, 1], c[:, 1] + 1, c[:, 3]
        row_b, lo_b, hi_b = c[:, 3], c[:, 0] + 1, c[:, 2]
    params = jnp.stack([row_a, lo_a, hi_a, row_b, lo_b, hi_b],
                       axis=1).astype(jnp.int32)             # (B, 6) -> SMEM

    kpm = key_padding_mask.astype(jnp.int32).reshape(B, 1, Lk)

    tq = _choose_tq(Lq)
    tb = _choose_tb(B, Lk, tq, D, Dv, queries.dtype.itemsize, need_weights)
    grid = (B // tb, Lq // tq)

    in_specs = [
        pl.BlockSpec((tb, tq, D), lambda bi, qi, p: (bi, qi, 0)),    # queries
        pl.BlockSpec((tb, Lk, D), lambda bi, qi, p: (bi, 0, 0)),     # keys (resident over q tiles)
        pl.BlockSpec((tb, Lk, Dv), lambda bi, qi, p: (bi, 0, 0)),    # values (resident over q tiles)
        pl.BlockSpec((tb, 1, Lk), lambda bi, qi, p: (bi, 0, 0)),     # key_padding_mask
    ]
    out_specs = [pl.BlockSpec((tb, tq, Dv), lambda bi, qi, p: (bi, qi, 0))]
    out_shape = [jax.ShapeDtypeStruct((B, Lq, Dv), queries.dtype)]
    if need_weights:
        out_specs.append(pl.BlockSpec((tb, tq, Lk), lambda bi, qi, p: (bi, qi, 0)))
        out_shape.append(jax.ShapeDtypeStruct((B, Lq, Lk), jnp.float32))

    kernel = partial(_attention_kernel, tb=tb, tq=tq, need_weights=need_weights)

    results = pl.pallas_call(
        kernel,
        grid_spec=pltpu.PrefetchScalarGridSpec(
            num_scalar_prefetch=1,
            grid=grid,
            in_specs=in_specs,
            out_specs=out_specs,
        ),
        out_shape=out_shape,
        compiler_params=pltpu.CompilerParams(
            dimension_semantics=("parallel", "parallel"),
            vmem_limit_bytes=48 * 1024 * 1024,
        ),
    )(params, queries, keys, values, kpm)

    if need_weights:
        out, attn = results
        return out, attn
    (out,) = results
    return out, None


def _reference(queries, keys, values, key_padding_mask, cls_sep_idxs):
    """Pure NumPy transcription of the PyTorch forward (for verification)."""
    q = np.asarray(queries, dtype=np.float32)
    k = np.asarray(keys, dtype=np.float32)
    v = np.asarray(values, dtype=np.float32)
    kpm = np.asarray(key_padding_mask, dtype=bool)
    c = np.asarray(cls_sep_idxs)
    B, Lq, D = q.shape
    Lk = k.shape[1]
    scores = np.einsum("bqd,bkd->bqk", q, k) / np.sqrt(np.float32(D))
    mask = np.broadcast_to(kpm[:, None, :], (B, Lq, Lk)).copy()
    for b in range(B):
        if c.shape[1] == 3:
            mask[b, c[b, 1], c[b, 1] + 1:c[b, 2] + 1] = True
            mask[b, c[b, 1], 0] = True
            mask[b, c[b, 2], c[b, 0] + 1:c[b, 1] + 1] = True
            mask[b, c[b, 2], 0] = True
        else:
            mask[b, c[b, 1], c[b, 1] + 1:c[b, 3] + 1] = True
            mask[b, c[b, 1], 0] = True
            mask[b, c[b, 3], c[b, 0] + 1:c[b, 2] + 1] = True
            mask[b, c[b, 3], 0] = True
    scores = scores - np.where(mask, np.inf, 0.0).astype(np.float32)
    scores = scores - scores.max(axis=-1, keepdims=True)
    e = np.exp(scores)
    attn = e / e.sum(axis=-1, keepdims=True)
    out = np.einsum("bqk,bkd->bqd", attn, v)
    return out, attn


if __name__ == "__main__":
    B, L, D, Dv = 2, 8, 32, 32
    rng = jax.random.PRNGKey(0)
    kq, kk, kv = jax.random.split(rng, 3)
    queries = jax.random.normal(kq, (B, L, D), dtype=jnp.float32)
    keys = jax.random.normal(kk, (B, L, D), dtype=jnp.float32)
    values = jax.random.normal(kv, (B, L, Dv), dtype=jnp.float32)

    # batch 0: last key is padding; batch 1: no padding
    key_padding_mask = jnp.array(
        [[False] * 7 + [True],
         [False] * 8], dtype=jnp.bool_)
    # (B, 3) cls/sep indices: 0 <= cls < sep1 < sep2 < L
    cls_sep_idxs = jnp.array([[0, 3, 6], [0, 2, 7]], dtype=jnp.int32)

    out_w, attn = my_dot_product_attention(
        queries, keys, values, key_padding_mask, cls_sep_idxs,
        need_weights=True)
    out_nw, no_w = my_dot_product_attention(
        queries, keys, values, key_padding_mask, cls_sep_idxs,
        need_weights=False)
    out_w = jax.block_until_ready(out_w)
    attn = jax.block_until_ready(attn)
    out_nw = jax.block_until_ready(out_nw)

    ref_out, ref_attn = _reference(queries, keys, values,
                                   key_padding_mask, cls_sep_idxs)
    np.testing.assert_allclose(np.asarray(attn), ref_attn, rtol=1e-5, atol=1e-5)
    np.testing.assert_allclose(np.asarray(out_w), ref_out, rtol=1e-5, atol=1e-5)
    np.testing.assert_allclose(np.asarray(out_nw), ref_out, rtol=1e-5, atol=1e-5)
    assert no_w is None
    print("KERNEL_OK")
</pallas_src>

<mosaic_0001>
module attributes {stable_mosaic.version = 11 : i64} {
  func.func @_attention_kernel(%arg0: i32, %arg1: i32, %arg2: memref<2x6xi32, #tpu.memory_space<smem>>, %arg3: memref<2x8x32xf32, #tpu.memory_space<vmem>>, %arg4: memref<2x8x32xf32, #tpu.memory_space<vmem>>, %arg5: memref<2x8x32xf32, #tpu.memory_space<vmem>>, %arg6: memref<2x1x8xi32, #tpu.memory_space<vmem>>, %arg7: memref<2x8x32xf32, #tpu.memory_space<vmem>>, %arg8: memref<2x8x8xf32, #tpu.memory_space<vmem>>) attributes {dimension_semantics = [#tpu.dimension_semantics<parallel>, #tpu.dimension_semantics<parallel>], iteration_bounds = array<i64: 1, 1>, scalar_prefetch = 1 : i64, scratch_operands = 0 : i64, tpu.core_type = #tpu.core_type<tc>, window_params = [{transform_indices = @transform_0, window_bounds = array<i64: 2, 8, 32>}, {transform_indices = @transform_1, window_bounds = array<i64: 2, 8, 32>}, {transform_indices = @transform_2, window_bounds = array<i64: 2, 8, 32>}, {transform_indices = @transform_3, window_bounds = array<i64: 2, 1, 8>}, {transform_indices = @transform_4, window_bounds = array<i64: 2, 8, 32>}, {transform_indices = @transform_5, window_bounds = array<i64: 2, 8, 8>}]} {
    %c8_i32 = arith.constant 8 : i32
    %0 = arith.muli %arg1, %c8_i32 : i32
    %1 = tpu.iota {dimensions = array<i32: 0>} : vector<8x1xi32>
    %2 = vector.broadcast %0 : i32 to vector<8x1xi32>
    %3 = arith.addi %1, %2 : vector<8x1xi32>
    %4 = tpu.iota {dimensions = array<i32: 1>} : vector<1x8xi32>
    %c2_i32 = arith.constant 2 : i32
    %5 = arith.muli %arg0, %c2_i32 : i32
    %c0_i32 = arith.constant 0 : i32
    %6 = arith.addi %5, %c0_i32 : i32
    %c0 = arith.constant 0 : index
    %c0_0 = arith.constant 0 : index
    %c0_1 = arith.constant 0 : index
    %7 = vector.load %arg3[%c0, %c0_0, %c0_1] : memref<2x8x32xf32, #tpu.memory_space<vmem>>, vector<1x8x32xf32>
    %8 = vector.shape_cast %7 : vector<1x8x32xf32> to vector<8x32xf32>
    %c0_2 = arith.constant 0 : index
    %c0_3 = arith.constant 0 : index
    %c0_4 = arith.constant 0 : index
    %9 = vector.load %arg4[%c0_2, %c0_3, %c0_4] : memref<2x8x32xf32, #tpu.memory_space<vmem>>, vector<1x8x32xf32>
    %10 = vector.shape_cast %9 : vector<1x8x32xf32> to vector<8x32xf32>
    %c0_5 = arith.constant 0 : index
    %c0_6 = arith.constant 0 : index
    %c0_7 = arith.constant 0 : index
    %11 = vector.load %arg5[%c0_5, %c0_6, %c0_7] : memref<2x8x32xf32, #tpu.memory_space<vmem>>, vector<1x8x32xf32>
    %12 = vector.shape_cast %11 : vector<1x8x32xf32> to vector<8x32xf32>
    %cst = arith.constant 0.176776692 : f32
    %13 = vector.broadcast %cst : f32 to vector<8x32xf32>
    %14 = arith.mulf %8, %13 : vector<8x32xf32>
    %cst_8 = arith.constant dense<0.000000e+00> : vector<8x8xf32>
    %15 = tpu.matmul %14, %10, %cst_8 {dimension_numbers = #tpu.dot_dimension_numbers<[1], [1], [0], [0], [0, 0, 1, 0], [], []>} : vector<8x32xf32>, vector<8x32xf32>, vector<8x8xf32> -> vector<8x8xf32>
    %16 = arith.index_cast %6 : i32 to index
    %c0_9 = arith.constant 0 : index
    %17 = memref.load %arg2[%16, %c0_9] : memref<2x6xi32, #tpu.memory_space<smem>>
    %18 = arith.index_cast %6 : i32 to index
    %c1 = arith.constant 1 : index
    %19 = memref.load %arg2[%18, %c1] : memref<2x6xi32, #tpu.memory_space<smem>>
    %20 = arith.index_cast %6 : i32 to index
    %c2 = arith.constant 2 : index
    %21 = memref.load %arg2[%20, %c2] : memref<2x6xi32, #tpu.memory_space<smem>>
    %22 = arith.index_cast %6 : i32 to index
    %c3 = arith.constant 3 : index
    %23 = memref.load %arg2[%22, %c3] : memref<2x6xi32, #tpu.memory_space<smem>>
    %24 = arith.index_cast %6 : i32 to index
    %c4 = arith.constant 4 : index
    %25 = memref.load %arg2[%24, %c4] : memref<2x6xi32, #tpu.memory_space<smem>>
    %26 = arith.index_cast %6 : i32 to index
    %c5 = arith.constant 5 : index
    %27 = memref.load %arg2[%26, %c5] : memref<2x6xi32, #tpu.memory_space<smem>>
    %28 = vector.broadcast %17 : i32 to vector<8x1xi32>
    %29 = arith.cmpi eq, %3, %28 : vector<8x1xi32>
    %30 = vector.broadcast %19 : i32 to vector<1x8xi32>
    %31 = arith.cmpi sge, %4, %30 : vector<1x8xi32>
    %32 = vector.broadcast %21 : i32 to vector<1x8xi32>
    %33 = arith.cmpi sle, %4, %32 : vector<1x8xi32>
    %34 = arith.andi %31, %33 : vector<1x8xi1>
    %c0_i32_10 = arith.constant 0 : i32
    %35 = vector.broadcast %c0_i32_10 : i32 to vector<1x8xi32>
    %36 = arith.cmpi eq, %4, %35 : vector<1x8xi32>
    %37 = arith.ori %34, %36 : vector<1x8xi1>
    %38 = vector.broadcast %29 : vector<8x1xi1> to vector<8x8xi1>
    %39 = vector.broadcast %37 : vector<1x8xi1> to vector<8x8xi1>
    %40 = arith.andi %38, %39 : vector<8x8xi1>
    %41 = vector.broadcast %23 : i32 to vector<8x1xi32>
    %42 = arith.cmpi eq, %3, %41 : vector<8x1xi32>
    %43 = vector.broadcast %25 : i32 to vector<1x8xi32>
    %44 = arith.cmpi sge, %4, %43 : vector<1x8xi32>
    %45 = vector.broadcast %27 : i32 to vector<1x8xi32>
    %46 = arith.cmpi sle, %4, %45 : vector<1x8xi32>
    %47 = arith.andi %44, %46 : vector<1x8xi1>
    %c0_i32_11 = arith.constant 0 : i32
    %48 = vector.broadcast %c0_i32_11 : i32 to vector<1x8xi32>
    %49 = arith.cmpi eq, %4, %48 : vector<1x8xi32>
    %50 = arith.ori %47, %49 : vector<1x8xi1>
    %51 = vector.broadcast %42 : vector<8x1xi1> to vector<8x8xi1>
    %52 = vector.broadcast %50 : vector<1x8xi1> to vector<8x8xi1>
    %53 = arith.andi %51, %52 : vector<8x8xi1>
    %c0_12 = arith.constant 0 : index
    %c0_13 = arith.constant 0 : index
    %c0_14 = arith.constant 0 : index
    %54 = vector.load %arg6[%c0_12, %c0_13, %c0_14] : memref<2x1x8xi32, #tpu.memory_space<vmem>>, vector<1x1x8xi32>
    %55 = vector.shape_cast %54 : vector<1x1x8xi32> to vector<1x8xi32>
    %c0_i32_15 = arith.constant 0 : i32
    %56 = vector.broadcast %c0_i32_15 : i32 to vector<1x8xi32>
    %57 = arith.cmpi ne, %55, %56 : vector<1x8xi32>
    %58 = vector.broadcast %57 : vector<1x8xi1> to vector<8x8xi1>
    %59 = arith.ori %58, %40 : vector<8x8xi1>
    %60 = arith.ori %59, %53 : vector<8x8xi1>
    %cst_16 = arith.constant 0xFF800000 : f32
    %61 = vector.broadcast %cst_16 : f32 to vector<8x8xf32>
    %62 = arith.select %60, %61, %15 : vector<8x8xi1>, vector<8x8xf32>
    %cst_17 = arith.constant dense<0xFF800000> : vector<8xf32>
    %63 = vector.multi_reduction <maximumf>, %62, %cst_17 [1] : vector<8x8xf32> to vector<8xf32>
    %64 = vector.shape_cast %63 : vector<8xf32> to vector<8x1xf32>
    %65 = vector.broadcast %64 : vector<8x1xf32> to vector<8x8xf32>
    %66 = arith.subf %62, %65 : vector<8x8xf32>
    %67 = math.exp %66 : vector<8x8xf32>
    %cst_18 = arith.constant dense<0.000000e+00> : vector<8xf32>
    %68 = vector.multi_reduction <add>, %67, %cst_18 [1] : vector<8x8xf32> to vector<8xf32>
    %69 = vector.shape_cast %68 : vector<8xf32> to vector<8x1xf32>
    %cst_19 = arith.constant 1.000000e+00 : f32
    %70 = vector.broadcast %cst_19 : f32 to vector<8x1xf32>
    %71 = arith.divf %70, %69 : vector<8x1xf32>
    %72 = vector.broadcast %71 : vector<8x1xf32> to vector<8x8xf32>
    %73 = arith.mulf %67, %72 : vector<8x8xf32>
    %c0_20 = arith.constant 0 : index
    %c0_21 = arith.constant 0 : index
    %c0_22 = arith.constant 0 : index
    %74 = vector.load %arg8[%c0_20, %c0_21, %c0_22] : memref<2x8x8xf32, #tpu.memory_space<vmem>>, vector<1x8x8xf32>
    %75 = vector.shape_cast %74 : vector<1x8x8xf32> to vector<8x8xf32>
    %76 = vector.shape_cast %73 : vector<8x8xf32> to vector<1x8x8xf32>
    tpu.vector_store %arg8[%c0_20, %c0_21, %c0_22], %76 {strides = array<i32>} : memref<2x8x8xf32, #tpu.memory_space<vmem>>, vector<1x8x8xf32>,
    %cst_23 = arith.constant dense<0.000000e+00> : vector<8x32xf32>
    %77 = tpu.matmul %73, %12, %cst_23 {dimension_numbers = #tpu.dot_dimension_numbers<[1], [0], [0], [1], [0, 0, 1, 1], [], []>} : vector<8x8xf32>, vector<8x32xf32>, vector<8x32xf32> -> vector<8x32xf32>
    %c0_24 = arith.constant 0 : index
    %c0_25 = arith.constant 0 : index
    %c0_26 = arith.constant 0 : index
    %78 = vector.load %arg7[%c0_24, %c0_25, %c0_26] : memref<2x8x32xf32, #tpu.memory_space<vmem>>, vector<1x8x32xf32>
    %79 = vector.shape_cast %78 : vector<1x8x32xf32> to vector<8x32xf32>
    %80 = vector.shape_cast %77 : vector<8x32xf32> to vector<1x8x32xf32>
    tpu.vector_store %arg7[%c0_24, %c0_25, %c0_26], %80 {strides = array<i32>} : memref<2x8x32xf32, #tpu.memory_space<vmem>>, vector<1x8x32xf32>,
    %c2_i32_27 = arith.constant 2 : i32
    %81 = arith.muli %arg0, %c2_i32_27 : i32
    %c1_i32 = arith.constant 1 : i32
    %82 = arith.addi %81, %c1_i32 : i32
    %c1_28 = arith.constant 1 : index
    %c0_29 = arith.constant 0 : index
    %c0_30 = arith.constant 0 : index
    %83 = vector.load %arg3[%c1_28, %c0_29, %c0_30] : memref<2x8x32xf32, #tpu.memory_space<vmem>>, vector<1x8x32xf32>
    %84 = vector.shape_cast %83 : vector<1x8x32xf32> to vector<8x32xf32>
    %c1_31 = arith.constant 1 : index
    %c0_32 = arith.constant 0 : index
    %c0_33 = arith.constant 0 : index
    %85 = vector.load %arg4[%c1_31, %c0_32, %c0_33] : memref<2x8x32xf32, #tpu.memory_space<vmem>>, vector<1x8x32xf32>
    %86 = vector.shape_cast %85 : vector<1x8x32xf32> to vector<8x32xf32>
    %c1_34 = arith.constant 1 : index
    %c0_35 = arith.constant 0 : index
    %c0_36 = arith.constant 0 : index
    %87 = vector.load %arg5[%c1_34, %c0_35, %c0_36] : memref<2x8x32xf32, #tpu.memory_space<vmem>>, vector<1x8x32xf32>
    %88 = vector.shape_cast %87 : vector<1x8x32xf32> to vector<8x32xf32>
    %cst_37 = arith.constant 0.176776692 : f32
    %89 = vector.broadcast %cst_37 : f32 to vector<8x32xf32>
    %90 = arith.mulf %84, %89 : vector<8x32xf32>
    %cst_38 = arith.constant dense<0.000000e+00> : vector<8x8xf32>
    %91 = tpu.matmul %90, %86, %cst_38 {dimension_numbers = #tpu.dot_dimension_numbers<[1], [1], [0], [0], [0, 0, 1, 0], [], []>} : vector<8x32xf32>, vector<8x32xf32>, vector<8x8xf32> -> vector<8x8xf32>
    %92 = arith.index_cast %82 : i32 to index
    %c0_39 = arith.constant 0 : index
    %93 = memref.load %arg2[%92, %c0_39] : memref<2x6xi32, #tpu.memory_space<smem>>
    %94 = arith.index_cast %82 : i32 to index
    %c1_40 = arith.constant 1 : index
    %95 = memref.load %arg2[%94, %c1_40] : memref<2x6xi32, #tpu.memory_space<smem>>
    %96 = arith.index_cast %82 : i32 to index
    %c2_41 = arith.constant 2 : index
    %97 = memref.load %arg2[%96, %c2_41] : memref<2x6xi32, #tpu.memory_space<smem>>
    %98 = arith.index_cast %82 : i32 to index
    %c3_42 = arith.constant 3 : index
    %99 = memref.load %arg2[%98, %c3_42] : memref<2x6xi32, #tpu.memory_space<smem>>
    %100 = arith.index_cast %82 : i32 to index
    %c4_43 = arith.constant 4 : index
    %101 = memref.load %arg2[%100, %c4_43] : memref<2x6xi32, #tpu.memory_space<smem>>
    %102 = arith.index_cast %82 : i32 to index
    %c5_44 = arith.constant 5 : index
    %103 = memref.load %arg2[%102, %c5_44] : memref<2x6xi32, #tpu.memory_space<smem>>
    %104 = vector.broadcast %93 : i32 to vector<8x1xi32>
    %105 = arith.cmpi eq, %3, %104 : vector<8x1xi32>
    %106 = vector.broadcast %95 : i32 to vector<1x8xi32>
    %107 = arith.cmpi sge, %4, %106 : vector<1x8xi32>
    %108 = vector.broadcast %97 : i32 to vector<1x8xi32>
    %109 = arith.cmpi sle, %4, %108 : vector<1x8xi32>
    %110 = arith.andi %107, %109 : vector<1x8xi1>
    %c0_i32_45 = arith.constant 0 : i32
    %111 = vector.broadcast %c0_i32_45 : i32 to vector<1x8xi32>
    %112 = arith.cmpi eq, %4, %111 : vector<1x8xi32>
    %113 = arith.ori %110, %112 : vector<1x8xi1>
    %114 = vector.broadcast %105 : vector<8x1xi1> to vector<8x8xi1>
    %115 = vector.broadcast %113 : vector<1x8xi1> to vector<8x8xi1>
    %116 = arith.andi %114, %115 : vector<8x8xi1>
    %117 = vector.broadcast %99 : i32 to vector<8x1xi32>
    %118 = arith.cmpi eq, %3, %117 : vector<8x1xi32>
    %119 = vector.broadcast %101 : i32 to vector<1x8xi32>
    %120 = arith.cmpi sge, %4, %119 : vector<1x8xi32>
    %121 = vector.broadcast %103 : i32 to vector<1x8xi32>
    %122 = arith.cmpi sle, %4, %121 : vector<1x8xi32>
    %123 = arith.andi %120, %122 : vector<1x8xi1>
    %c0_i32_46 = arith.constant 0 : i32
    %124 = vector.broadcast %c0_i32_46 : i32 to vector<1x8xi32>
    %125 = arith.cmpi eq, %4, %124 : vector<1x8xi32>
    %126 = arith.ori %123, %125 : vector<1x8xi1>
    %127 = vector.broadcast %118 : vector<8x1xi1> to vector<8x8xi1>
    %128 = vector.broadcast %126 : vector<1x8xi1> to vector<8x8xi1>
    %129 = arith.andi %127, %128 : vector<8x8xi1>
    %c1_47 = arith.constant 1 : index
    %c0_48 = arith.constant 0 : index
    %c0_49 = arith.constant 0 : index
    %130 = vector.load %arg6[%c1_47, %c0_48, %c0_49] : memref<2x1x8xi32, #tpu.memory_space<vmem>>, vector<1x1x8xi32>
    %131 = vector.shape_cast %130 : vector<1x1x8xi32> to vector<1x8xi32>
    %c0_i32_50 = arith.constant 0 : i32
    %132 = vector.broadcast %c0_i32_50 : i32 to vector<1x8xi32>
    %133 = arith.cmpi ne, %131, %132 : vector<1x8xi32>
    %134 = vector.broadcast %133 : vector<1x8xi1> to vector<8x8xi1>
    %135 = arith.ori %134, %116 : vector<8x8xi1>
    %136 = arith.ori %135, %129 : vector<8x8xi1>
    %cst_51 = arith.constant 0xFF800000 : f32
    %137 = vector.broadcast %cst_51 : f32 to vector<8x8xf32>
    %138 = arith.select %136, %137, %91 : vector<8x8xi1>, vector<8x8xf32>
    %cst_52 = arith.constant dense<0xFF800000> : vector<8xf32>
    %139 = vector.multi_reduction <maximumf>, %138, %cst_52 [1] : vector<8x8xf32> to vector<8xf32>
    %140 = vector.shape_cast %139 : vector<8xf32> to vector<8x1xf32>
    %141 = vector.broadcast %140 : vector<8x1xf32> to vector<8x8xf32>
    %142 = arith.subf %138, %141 : vector<8x8xf32>
    %143 = math.exp %142 : vector<8x8xf32>
    %cst_53 = arith.constant dense<0.000000e+00> : vector<8xf32>
    %144 = vector.multi_reduction <add>, %143, %cst_53 [1] : vector<8x8xf32> to vector<8xf32>
    %145 = vector.shape_cast %144 : vector<8xf32> to vector<8x1xf32>
    %cst_54 = arith.constant 1.000000e+00 : f32
    %146 = vector.broadcast %cst_54 : f32 to vector<8x1xf32>
    %147 = arith.divf %146, %145 : vector<8x1xf32>
    %148 = vector.broadcast %147 : vector<8x1xf32> to vector<8x8xf32>
    %149 = arith.mulf %143, %148 : vector<8x8xf32>
    %c1_55 = arith.constant 1 : index
    %c0_56 = arith.constant 0 : index
    %c0_57 = arith.constant 0 : index
    %150 = vector.load %arg8[%c1_55, %c0_56, %c0_57] : memref<2x8x8xf32, #tpu.memory_space<vmem>>, vector<1x8x8xf32>
    %151 = vector.shape_cast %150 : vector<1x8x8xf32> to vector<8x8xf32>
    %152 = vector.shape_cast %149 : vector<8x8xf32> to vector<1x8x8xf32>
    tpu.vector_store %arg8[%c1_55, %c0_56, %c0_57], %152 {strides = array<i32>} : memref<2x8x8xf32, #tpu.memory_space<vmem>>, vector<1x8x8xf32>,
    %cst_58 = arith.constant dense<0.000000e+00> : vector<8x32xf32>
    %153 = tpu.matmul %149, %88, %cst_58 {dimension_numbers = #tpu.dot_dimension_numbers<[1], [0], [0], [1], [0, 0, 1, 1], [], []>} : vector<8x8xf32>, vector<8x32xf32>, vector<8x32xf32> -> vector<8x32xf32>
    %c1_59 = arith.constant 1 : index
    %c0_60 = arith.constant 0 : index
    %c0_61 = arith.constant 0 : index
    %154 = vector.load %arg7[%c1_59, %c0_60, %c0_61] : memref<2x8x32xf32, #tpu.memory_space<vmem>>, vector<1x8x32xf32>
    %155 = vector.shape_cast %154 : vector<1x8x32xf32> to vector<8x32xf32>
    %156 = vector.shape_cast %153 : vector<8x32xf32> to vector<1x8x32xf32>
    tpu.vector_store %arg7[%c1_59, %c0_60, %c0_61], %156 {strides = array<i32>} : memref<2x8x32xf32, #tpu.memory_space<vmem>>, vector<1x8x32xf32>,
    return
  }
  func.func @transform_0(%arg0: i32, %arg1: i32, %arg2: memref<2x6xi32, #tpu.memory_space<smem>>) -> (i32, i32, i32) {
    %c0_i32 = arith.constant 0 : i32
    %c0_i32_0 = arith.constant 0 : i32
    return %arg0, %arg1, %c0_i32 : i32, i32, i32
  }
  func.func @transform_1(%arg0: i32, %arg1: i32, %arg2: memref<2x6xi32, #tpu.memory_space<smem>>) -> (i32, i32, i32) {
    %c0_i32 = arith.constant 0 : i32
    %c0_i32_0 = arith.constant 0 : i32
    %c0_i32_1 = arith.constant 0 : i32
    return %arg0, %c0_i32, %c0_i32_0 : i32, i32, i32
  }
  func.func @transform_2(%arg0: i32, %arg1: i32, %arg2: memref<2x6xi32, #tpu.memory_space<smem>>) -> (i32, i32, i32) {
    %c0_i32 = arith.constant 0 : i32
    %c0_i32_0 = arith.constant 0 : i32
    %c0_i32_1 = arith.constant 0 : i32
    return %arg0, %c0_i32, %c0_i32_0 : i32, i32, i32
  }
  func.func @transform_3(%arg0: i32, %arg1: i32, %arg2: memref<2x6xi32, #tpu.memory_space<smem>>) -> (i32, i32, i32) {
    %c0_i32 = arith.constant 0 : i32
    %c0_i32_0 = arith.constant 0 : i32
    %c0_i32_1 = arith.constant 0 : i32
    return %arg0, %c0_i32, %c0_i32_0 : i32, i32, i32
  }
  func.func @transform_4(%arg0: i32, %arg1: i32, %arg2: memref<2x6xi32, #tpu.memory_space<smem>>) -> (i32, i32, i32) {
    %c0_i32 = arith.constant 0 : i32
    %c0_i32_0 = arith.constant 0 : i32
    return %arg0, %arg1, %c0_i32 : i32, i32, i32
  }
  func.func @transform_5(%arg0: i32, %arg1: i32, %arg2: memref<2x6xi32, #tpu.memory_space<smem>>) -> (i32, i32, i32) {
    %c0_i32 = arith.constant 0 : i32
    %c0_i32_0 = arith.constant 0 : i32
    return %arg0, %arg1, %c0_i32 : i32, i32, i32
  }
}

</mosaic_0001>

<bundles_post_ra>
// kernel: my_dot_product_attention.1
= control target key start
LH: loop header
LB: loop body
LE: loop exit
PB: predicated region body
PF: predicated region fallthrough
CT: control target
= control target key end

     0   :  { %s480_s24 = smov [#allocation3]   ;;  %s663_s0 = inlined_call_operand.vmem [shape: s32[2,6], index: 0, kind: input, shape index: {}]   ;;  %s664_s1 = inlined_call_operand.vmem [shape: f32[2,8,32], index: 1, kind: input, shape index: {}]   ;;  %s665_s2 = inlined_call_operand.vmem [shape: f32[2,8,32], index: 2, kind: input, shape index: {}]   ;;  %s666_s3 = inlined_call_operand.hbm [shape: f32[2,8,32], index: 3, kind: input, shape index: {}]   ;;  %s667_s4 = inlined_call_operand.vmem [shape: s32[2,1,8], index: 4, kind: input, shape index: {}]   ;;  %s668_s5 = inlined_call_operand.hbm [shape: f32[2,8,32], index: 5, kind: output, shape index: {0}]   ;;  %s669_s6 = inlined_call_operand.hbm [shape: f32[2,8,8], index: 6, kind: output, shape index: {1}]  }
   0x1   :  { %s13_s23 = sshll.u32 %s663_s0, 4  ;;  %s14_s23 = int_to_ptr.vmem [resolvable:$true] %s13_s23 }
   0x2   :  { %16 = dma.vmem_to_smem %s14_s23, 32, %s480_s24, [#allocation2] }
   0x3   :  { %472 = dma.done.wait [#allocation2], 32 }
   0x4   :  { %473 = vsyncadd [#allocation2], 4294967264 }
   0x5   :  { %19 = sfence }
   0x6   :  { %20 = vsyncpa [#allocation5], 0 }
   0x7   :  { %21 = vsyncpa [#allocation6], 0 }
   0x8   :  { %22 = vsyncpa [#allocation9], 0  ;;  %s31_s27 = sshll.u32 %s666_s3, 4  ;;  %s481_s28 = smov [#allocation4]   ;;  %s32_s27 = int_to_ptr.hbm [resolvable:$true] %s31_s27 }
   0x9   :  { %s33_s29 = sshll.u32 %s481_s28, 4  ;;  %s482_s30 = smov 128   ;;  %s34_s29 = int_to_ptr.vmem [resolvable:$true] %s33_s29 }
   0xa   :  { %s483_s7 = smov 8  }
   0xb   :  { %39 = dma.hbm_to_vmem [thread:$0]  %s32_s27, 256, %s34_s29, [#allocation5], %s482_s30, %s482_s30, %s483_s7  }
   0xc   :  { %474 = dma.done.wait [#allocation5], 256  }
   0xd   :  { %475 = vsyncadd [#allocation5], 4294967040  ;;  %vm670_vm0 = vcmask 261120   ;;  %v362_v0 = vld [vmem:[%s665_s2 + $0x8] sm:$0xff]  ;;  %v55_v2 = vld [vmem:[%s665_s2] sm:$0xff]  ;;  %s366_s14 = sld [smem:[#allocation3 + $0x81]]  ;;  %v47_v6 = vlaneseq }
   0xe   :  { %v361_v1 = vld [vmem:[%s664_s1 + $0x8] sm:$0xff]  ;;  %363 = vmatpush.xpose.msk.msra.mxu2 %vm670_vm0, %v362_v0  ;;  %353 = vmatpush.xpose.msk.msra.mxu0 %vm670_vm0, %v55_v2  ;;  %v54_v4 = vld [vmem:[%s664_s1] sm:$0xff]  ;;  %s367_s15 = sld [smem:[#allocation3 + $0x82]]  ;;  %v484_v20 = vmov 0   ;;  %s335_s8 = sshll.u32 %s669_s6, 4  ;;  %s336_s8 = int_to_ptr.hbm [resolvable:$true] %s335_s8 }
   0xf   :  { %v190_v3 = vmul.f32 0.17677669, %v361_v1  ;;  %v57_v5 = vmul.f32 0.17677669, %v54_v4  ;;  %s369_s16 = sld [smem:[#allocation3 + $0x84]]  ;;  %v52_v7 = vand.u32 127, %v47_v6 }
  0x10   :  { %s370_s17 = sld [smem:[#allocation3 + $0x85]]  ;;  %v371_v10 = vld [vmem:[%s667_s4 + $0x1] sm:$0x1]  ;;  %v48_v15 = vshrl.u32 %v47_v6, 7  ;;  %v124_v19 = vld [vmem:[%s667_s4] sm:$0x1] }
  0x11   :  { %364 = vmatmul.msk.f32.vlgmr.msra.gmra.mxu2 %vm670_vm0, %v190_v3  ;;  %354 = vmatmul.msk.f32.vlgmr.msra.gmra.mxu0 %vm670_vm0, %v57_v5  ;;  %s365_s2 = sld [smem:[#allocation3 + $0x80]]  ;;  %vm257_vm3 = vcmp.ne.s32.totalorder %v371_v10, 0  ;;  %vm104_vm6 = vcmp.eq.s32.totalorder %v52_v7, 0  ;;  %vm125_vm11 = vcmp.ne.s32.totalorder %v124_v19, 0  ;;  %v189_v55 = vld [vmem:[#allocation4 + $0x8] sm:$0xff]  ;;  %v56_v56 = vld [vmem:[#allocation4] sm:$0xff] }
  0x12   :  { %s547_s18 = sld [smem:[#allocation3 + $0x83]]  ;;  %v258_v21 = vsel %vm257_vm3, 1, %v484_v20  ;;  %v126_v35 = vsel %vm125_vm11, 1, %v484_v20  ;;  %309 = vmatpush.msra.mxu3 %v189_v55  ;;  %177 = vmatpush.msra.mxu1 %v56_v56  ;;  %s485_s4 = smov [#allocation8]  }
  0x13   :  { %s549_s19 = sld [smem:[#allocation3 + $0x1]]  ;;  %v231_v8 = vstv %s366_s14  ;;  %v259_v29 = vperm.slane %v258_v21, 0  ;;  %v127_v38 = vperm.slane %v126_v35, 0  ;;  %s333_s28 = sshll.u32 %s485_s4, 4  ;;  %s334_s28 = int_to_ptr.vmem [resolvable:$true] %s333_s28 }
  0x14   :  { %s551_s20 = sld [smem:[#allocation3 + $0x2]]  ;;  %v233_v9 = vstv %s367_s15  ;;  %vm560_vm1 = vcmp.ge.s32.totalorder %v52_v7, %v231_v8  ;;  %s486_s9 = smov [#allocation7]  }
  0x15   :  { %s553_s1 = sld [smem:[#allocation3 + $0x4]]  ;;  %v244_v11 = vstv %s369_s16  ;;  %vm564_vm2 = vcmp.le.s32.totalorder %v52_v7, %v233_v9  ;;  %s320_s10 = sshll.u32 %s486_s9, 4  ;;  %s321_s10 = int_to_ptr.vmem [resolvable:$true] %s320_s10 }
  0x16   :  { %s558_s23 = sld [smem:[#allocation3 + $0x5]]  ;;  %v246_v12 = vstv %s370_s17  ;;  %vm568_vm4 = vcmp.ge.s32.totalorder %v52_v7, %v244_v11  ;;  %vm235_vm7 = vmand %vm560_vm1, %vm564_vm2  ;;  %s322_s12 = sshll.u32 %s668_s5, 4  ;;  %s323_s12 = int_to_ptr.hbm [resolvable:$true] %s322_s12 }
  0x17   :  { %vm572_vm5 = vcmp.le.s32.totalorder %v52_v7, %v246_v12  ;;  %s576_s24 = sld [smem:[#allocation3]]  ;;  %v229_v18 = vstv %s365_s2  ;;  %vm597_vm10 = vmor %vm235_vm7, %vm104_vm6  ;;  %vm260_vm7 = vcmp.eq.s32.totalorder %v259_v29, 1 }
  0x18   :  { %s357_s27 = sld [smem:[#allocation3 + $0x3]]  ;;  %v242_v24 = vstv %s547_s18  ;;  %vm248_vm8 = vmand %vm568_vm4, %vm572_vm5  ;;  %vm592_vm9 = vcmp.eq.s32.totalorder %v48_v15, %v229_v18 }
  0x19   :  { %v99_v22 = vstv %s549_s19  ;;  %vm611_vm14 = vcmp.eq.s32.totalorder %v48_v15, %v242_v24  ;;  %vm616_vm15 = vmor %vm248_vm8, %vm104_vm6 }
  0x1a   :  { %v101_v23 = vstv %s551_s20  ;;  %vm603_vm12 = vcmp.ge.s32.totalorder %v52_v7, %v99_v22  ;;  %vm241_vm1 = vmand %vm592_vm9, %vm597_vm10 }
  0x1b   :  { %v113_v27 = vstv %s553_s1  ;;  %vm607_vm13 = vcmp.le.s32.totalorder %v52_v7, %v101_v23  ;;  %vm254_vm5 = vmand %vm611_vm14, %vm616_vm15  ;;  %vm128_vm14 = vcmp.eq.s32.totalorder %v127_v38, 1 }
  0x1c   :  { %v115_v28 = vstv %s558_s23  ;;  %vm624_vm2 = vcmp.ge.s32.totalorder %v52_v7, %v113_v27  ;;  %vm103_vm4 = vmand %vm603_vm12, %vm607_vm13 }
  0x1d   :  { %vm116_vm3 = vcmp.le.s32.totalorder %v52_v7, %v115_v28  ;;  %v97_v36 = vstv %s576_s24  ;;  %vm105_vm10 = vmor %vm103_vm4, %vm104_vm6 }
  0x1e   :  { %v111_v37 = vstv %s357_s27  ;;  %vm117_vm8 = vmand %vm624_vm2, %vm116_vm3  ;;  %vm98_vm9 = vcmp.eq.s32.totalorder %v48_v15, %v97_v36  ;;  %vm132_vm3 = vcmask 64512  }
  0x1f   :  { %vm261_vm11 = vmor %vm260_vm7, %vm241_vm1  ;;  %vm112_vm0 = vcmp.eq.s32.totalorder %v48_v15, %v111_v37 }
  0x20   :  { %vm118_vm12 = vmor %vm117_vm8, %vm104_vm6 }
  0x21   :  { %vm110_vm13 = vmand %vm98_vm9, %vm105_vm10 }
  0x22   :  { %vm262_vm15 = vmor %vm261_vm11, %vm254_vm5 }
  0x23   :  { %vm123_vm2 = vmand %vm112_vm0, %vm118_vm12  ;;  %vm693_vm12 = vcmask 261120  }
  0x24   :  { %vm129_vm4 = vmor %vm128_vm14, %vm110_vm13 }
  0x25   :  { %vm130_vm1 = vmor %vm129_vm4, %vm123_vm2 }
  0x26   :  { %vm694_vm13 = vmmov %vm693_vm12 }
  0x8e   :  { %v82_v42 = vpop.f32.mrf.mxu0 }
  0x8f   :  { %v131_v43 = vsel %vm130_vm1, -inf, %v82_v42 }
  0x90   :  { %v133_v44 = vsel %vm132_vm3, %v131_v43, -inf }
  0x94   :  { %v214_v39 = vpop.f32.mrf.mxu2 }
  0x95   :  { %v263_v40 = vsel %vm262_vm15, -inf, %v214_v39 }
  0x96   :  { %v264_v41 = vsel %vm132_vm3, %v263_v40, -inf }
  0x97   :  { %265 = vmax.xlane.f32.xlu0 %v264_v41 }
  0x9f   :  { %134 = vmax.xlane.f32.xlu0 %v133_v44 }
 0x10a   :  { %v266_v45 = vpop.xlane.xlu0 %265 }
 0x10b   :  { %v267_v46 = vsub.f32 %v263_v40, %v266_v45 }
 0x10d   :  { %v268_v47 = vmul.f32 1.442695, %v267_v46 }
 0x10f   :  { %380 = vpow2.f32 %v268_v47 }
 0x112   :  { %v135_v48 = vpop.xlane.xlu0 %134 }
 0x113   :  { %v136_v49 = vsub.f32 %v131_v43, %v135_v48 }
 0x115   :  { %v381_v50 = vpop.eup %380  ;;  %v137_v51 = vmul.f32 1.442695, %v136_v49 }
 0x116   :  { %v270_v52 = vsel %vm132_vm3, %v381_v50, 0.0 }
 0x117   :  { %382 = vpow2.f32 %v137_v51  ;;  %271 = vadd.xlane.f32.xlu1 %v270_v52 }
 0x11d   :  { %v383_v53 = vpop.eup %382 }
 0x11e   :  { %v139_v54 = vsel %vm132_vm3, %v383_v53, 0.0 }
 0x11f   :  { %140 = vadd.xlane.f32.xlu1 %v139_v54 }
 0x18a   :  { %v272_v57 = vpop.xlane.xlu1 %271 }
 0x18b   :  { %384 = vrcp.f32 %v272_v57  ;;  %v284_v62 = vand.u32 2147483648, %v272_v57  ;;  %v282_v0 = vand.u32 2147483647, %v272_v57  ;;  %vm278_vm6 = vweird.f32 %v272_v57 }
 0x18d   :  { %v285_v3 = vor.u32 1.1754944e-38, %v284_v62  ;;  %vm283_vm7 = vcmp.eq.f32.partialorder %v282_v0, 8.507059e+37 }
 0x191   :  { %v385_v58 = vpop.eup %384 }
 0x192   :  { %v274_v59 = vmul.f32 %v385_v58, %v272_v57  ;;  %v141_v60 = vpop.xlane.xlu1 %140  ;;  %vm279_vm0 = vweird.f32 %v385_v58 }
 0x193   :  { %386 = vrcp.f32 %v141_v60  ;;  %vm280_vm5 = vmor %vm278_vm6, %vm279_vm0  ;;  %v153_v9 = vand.u32 2147483648, %v141_v60  ;;  %v151_v11 = vand.u32 2147483647, %v141_v60  ;;  %vm147_vm9 = vweird.f32 %v141_v60 }
 0x194   :  { %v275_v61 = vsub.f32 1.0, %v274_v59 }
 0x195   :  { %v154_v13 = vor.u32 1.1754944e-38, %v153_v9  ;;  %vm152_vm11 = vcmp.eq.f32.partialorder %v151_v11, 8.507059e+37 }
 0x196   :  { %v276_v63 = vmul.f32 %v385_v58, %v275_v61 }
 0x198   :  { %v277_v1 = vadd.f32 %v385_v58, %v276_v63 }
 0x199   :  { %v387_v2 = vpop.eup %386 }
 0x19a   :  { %v143_v4 = vmul.f32 %v387_v2, %v141_v60  ;;  %v281_v5 = vsel %vm280_vm5, %v385_v58, %v277_v1  ;;  %vm148_vm8 = vweird.f32 %v387_v2 }
 0x19b   :  { %v286_v6 = vsel %vm283_vm7, %v285_v3, %v281_v5  ;;  %vm149_vm10 = vmor %vm147_vm9, %vm148_vm8 }
 0x19c   :  { %v144_v7 = vsub.f32 1.0, %v143_v4  ;;  %v288_v8 = vmul.f32 %v381_v50, %v286_v6 }
 0x19e   :  { %v145_v10 = vmul.f32 %v387_v2, %v144_v7  ;;  %372 = vmatmul.msk.f32.vlgmr.msra.gmra.mxu3 %vm132_vm3, %v288_v8  ;;  %290 = vst.msk [vmem:[#allocation8 + $0x8] sm:$0xff] %vm132_vm3, %v288_v8 }
 0x1a0   :  { %v146_v12 = vadd.f32 %v387_v2, %v145_v10 }
 0x1a2   :  { %v150_v14 = vsel %vm149_vm10, %v387_v2, %v146_v12 }
 0x1a3   :  { %v155_v15 = vsel %vm152_vm11, %v154_v13, %v150_v14 }
 0x1a4   :  { %v157_v16 = vmul.f32 %v383_v53, %v155_v15 }
 0x1a6   :  { %360 = vmatmul.msk.f32.vlgmr.msra.gmra.mxu1 %vm132_vm3, %v157_v16  ;;  %158 = vst.msk [vmem:[#allocation8] sm:$0xff] %vm132_vm3, %v157_v16 }
 0x1a7   :  { %341 = dma.vmem_to_hbm [thread:$0]  %s334_s28, 256, %s336_s8, [#allocation9], %s482_s30, %s482_s30, %s483_s7  }
 0x221   :  { %v311_v17 = vpop.f32.mrf.mxu3 }
 0x222   :  { %315 = vst.msk [vmem:[#allocation7 + $0x8] sm:$0xff] %vm693_vm12, %v311_v17 }
 0x223   :  { %v179_v18 = vpop.f32.mrf.mxu1 }
 0x224   :  { %182 = vst.msk [vmem:[#allocation7] sm:$0xff] %vm694_vm13, %v179_v18 }
 0x225   :  { %328 = dma.vmem_to_hbm [thread:$0]  %s321_s10, 256, %s323_s12, [#allocation6], %s482_s30, %s482_s30, %s483_s7  }
 0x226   :  { %476 = dma.done.wait [#allocation6], 256  }
 0x227   :  { %477 = vsyncadd [#allocation6], 4294967040 }
 0x228   :  { %478 = dma.done.wait [#allocation9], 256  }
 0x229   :  { %479 = vsyncadd [#allocation9], 4294967040 }
 0x22a   :  { %350 = vsyncpa [#allocation5], 1 }
 0x22b   :  { %351 = vsyncpa [#allocation6], 1 }
 0x22c   :  { %352 = vsyncpa [#allocation9], 1 }

</bundles_post_ra>
